<compile_context>
chip_gen: v6e
topology: v6e:2x2x1
jax: 0.10.0
libtpu: 0.0.40
codegen_flags: <defaults>
</compile_context>

<pallas_src>
import jax
import jax.numpy as jnp
from jax.experimental import pallas as pl
from jax.experimental.pallas import tpu as pltpu


# ----------------------------------------------------------------------------
# Kernel
# ----------------------------------------------------------------------------
def _make_dual_edge_kernel(eft_resident):
    def kernel(idxq_ref, idxn_ref, eft_ref, efq_ref, eps_ref, b3_ref,
               w1_ref, b1_ref, w2_ref, b2_ref, w3_ref,
               out_ref, acc_ref):
        j = pl.program_id(1)                       # neighbor tile (reduction)

        @pl.when(j == 0)
        def _init():
            acc_ref[...] = jnp.zeros_like(acc_ref)

        # ---- dual adjacency tile (transposed): rows = neighbor edges of this
        # j tile, cols = query edges of this i tile.  Pure VPU compares; the
        # diagonal 1 (edge shares a node with itself) IS the GIN "1 * x_i"
        # self term, so no diagonal-specific work is needed here.
        src_q = idxq_ref[0:1, :]                   # (1, tq)  int32
        dst_q = idxq_ref[1:2, :]                   # (1, tq)
        src_n = idxn_ref[:, 0:1]                   # (te, 1)  int32
        dst_n = idxn_ref[:, 1:2]                   # (te, 1)

        shares = ((src_n == src_q) | (src_n == dst_q) |
                  (dst_n == src_q) | (dst_n == dst_q))          # (te, tq) bool

        if eft_resident:
            ef_n = eft_ref[j]                      # (2*in, te), resident slab
        else:
            ef_n = eft_ref[0]                      # (2*in, te), streamed block

        adj_t = shares.astype(ef_n.dtype)          # 0/1 exact (also in bf16)

        # ---- GIN aggregation on the MXU, f32 accumulator:
        #   acc[:, q] += sum_n ef[:, n] * adj[q, n]
        acc_ref[...] += jnp.dot(ef_n, adj_t,
                                preferred_element_type=jnp.float32)

        # ---- epilogue on the last neighbor tile: eps self term (f32) +
        # 3-layer MLP with ReLUs, lane-dense (1, tq) output.
        @pl.when(j == pl.num_programs(1) - 1)
        def _epilogue():
            eps = eps_ref[0]
            h = acc_ref[...] + eps * efq_ref[...]               # (2*in, tq) f32
            h = jnp.maximum(
                jnp.dot(w1_ref[...], h, preferred_element_type=jnp.float32)
                + b1_ref[...], 0.0)                             # (h1, tq)
            h = jnp.maximum(
                jnp.dot(w2_ref[...], h, preferred_element_type=jnp.float32)
                + b2_ref[...], 0.0)                             # (h2, tq)
            h = jnp.sum(w3_ref[...] * h, axis=0, keepdims=True) + b3_ref[0]
            out_ref[...] = jnp.maximum(h, 0.0)                  # (1, tq)

    return kernel


# ----------------------------------------------------------------------------
# Wrapper
# ----------------------------------------------------------------------------
def _pow2_floor(x):
    return 1 << (int(x).bit_length() - 1)


def _rup(x, m):
    return -(-x // m) * m


def dual_edge_model_forward(node_feats, edge_idx, params, *, tq=512, te=2048,
                            agg_dtype=jnp.bfloat16,
                            eft_resident_budget=4 << 20):
    """node_feats: [N, in_size] f32, edge_idx: [2, E] int (node ids >= 0).

    Returns [E] f32.  agg_dtype is the MXU feed dtype for the neighbor
    aggregation (bf16 by default; float32 reproduces exact-f32 aggregation).
    """
    node_feats = node_feats.astype(jnp.float32)
    E = int(edge_idx.shape[1])
    in2 = 2 * int(node_feats.shape[1])

    # Tiles are power-of-two multiples of 128 so e_pad divides evenly by both.
    cap = 1 << max(7, (E - 1).bit_length())        # smallest pow2 >= max(E,128)
    tq = _pow2_floor(max(128, min(tq, cap)))
    te = _pow2_floor(max(128, min(te, cap)))
    if cap >= 256:
        tq = min(tq, cap // 2)        # keep >= 2 query tiles for v7x's 2 TCs
    big = max(tq, te)
    e_pad = _rup(E, big)
    nj = e_pad // te

    src = edge_idx[0].astype(jnp.int32)
    dst = edge_idx[1].astype(jnp.int32)

    # Endpoint features, transposed to [2*in, E] (lane-dense edge axis), padded.
    ef_t = jnp.concatenate([node_feats[src], node_feats[dst]], axis=1).T
    ef_t = jnp.pad(ef_t, ((0, 0), (0, e_pad - E)))               # (in2, e_pad)
    # (nj, in2, te) slabs in the aggregation dtype for the MXU feed.
    eft_agg = ef_t.astype(agg_dtype).reshape(in2, nj, te).transpose(1, 0, 2)
    efq_f32 = ef_t                                  # exact f32 for eps * x_i

    # Padded edges get node id -1: real node ids are >= 0 so they never match
    # a real edge; padded-vs-padded matches multiply zero features and land in
    # discarded output columns.
    src_p = jnp.pad(src, (0, e_pad - E), constant_values=-1)
    dst_p = jnp.pad(dst, (0, e_pad - E), constant_values=-1)
    idx_row = jnp.stack([src_p, dst_p], axis=0)     # (2, e_pad)  query layout
    idx_col = jnp.stack([src_p, dst_p], axis=1)     # (e_pad, 2)  neighbor layout

    w1, b1, w2, b2, w3, b3, eps = (params["w1"], params["b1"], params["w2"],
                                   params["b2"], params["w3"], params["b3"],
                                   params["eps"])

    # --- resident-vs-streamed edge features -------------------------------
    agg_bytes = jnp.dtype(agg_dtype).itemsize
    sub = 32 // agg_bytes                           # sublane packing (8 / 16)
    in2_agg = _rup(in2, sub)
    in2_f32 = _rup(in2, 8)
    eft_resident = in2_agg * e_pad * agg_bytes <= eft_resident_budget
    if eft_resident:
        eft_spec = pl.BlockSpec((nj, in2, te), lambda i, j: (0, 0, 0))
    else:
        eft_spec = pl.BlockSpec((1, in2, te), lambda i, j: (j, 0, 0))

    # --- VMEM budget (sized from the actual footprint, v7x-safe cap) ------
    adj_vmem = 10 * te * tq * 4                     # adjacency tile + mask/bcast temps
    eft_vmem = 2 * in2_agg * (e_pad if eft_resident else te) * agg_bytes
    io_vmem = 2 * (8 * tq * 4                       # (2, tq)  query endpoints
                   + te * 128 * 4                   # (te, 2)  neighbor endpoints
                   + in2_f32 * tq * 4               # (in2, tq) f32 query feats
                   + 8 * tq * 4)                    # (1, tq)  output
    w_vmem = 2 * 4 * sum(int(p.size) for p in (w1, b1, w2, b2, w3))
    vmem_limit = int(min(56 << 20,
                         max(16 << 20,
                             adj_vmem + eft_vmem + io_vmem + w_vmem
                             + in2_f32 * tq * 4 + (2 << 20))))

    grid = (e_pad // tq, nj)
    smem = pl.BlockSpec(memory_space=pltpu.MemorySpace.SMEM)

    def const(shape):            # weights resident in VMEM across all steps
        return pl.BlockSpec(shape, lambda i, j: (0, 0))

    out = pl.pallas_call(
        _make_dual_edge_kernel(eft_resident),
        out_shape=jax.ShapeDtypeStruct((1, e_pad), jnp.float32),
        grid_spec=pltpu.PrefetchScalarGridSpec(
            num_scalar_prefetch=0,
            grid=grid,
            in_specs=[
                pl.BlockSpec((2, tq), lambda i, j: (0, i)),     # query endpoints
                pl.BlockSpec((te, 2), lambda i, j: (j, 0)),     # neighbor endpoints
                eft_spec,                                       # edge feats (agg dtype)
                pl.BlockSpec((in2, tq), lambda i, j: (0, i)),   # query feats f32
                smem,                                           # eps
                smem,                                           # b3
                const(w1.shape), const(b1.shape),
                const(w2.shape), const(b2.shape), const(w3.shape),
            ],
            out_specs=pl.BlockSpec((1, tq), lambda i, j: (0, i)),
            scratch_shapes=[pltpu.VMEM((in2, tq), jnp.float32)],
        ),
        compiler_params=pltpu.CompilerParams(
            dimension_semantics=("parallel", "arbitrary"),
            vmem_limit_bytes=vmem_limit,
        ),
    )(idx_row, idx_col, eft_agg, efq_f32, eps, b3, w1, b1, w2, b2, w3)

    return out[0, :E]


# ----------------------------------------------------------------------------
# Parameters (PyTorch-style init) and pure-JAX reference
# ----------------------------------------------------------------------------
def init_params(key, in_size=3, hidden1=16, hidden2=16):
    """Weights in PyTorch orientation [out, in]; biases [out, 1]; the last
    layer's weight stored as a column [hidden2, 1], its bias as a scalar."""
    ks = jax.random.split(key, 6)

    def linear(kw, kb, fan_in, fan_out):
        bound = 1.0 / jnp.sqrt(fan_in)
        w = jax.random.uniform(kw, (fan_out, fan_in), jnp.float32, -bound, bound)
        b = jax.random.uniform(kb, (fan_out, 1), jnp.float32, -bound, bound)
        return w, b

    w1, b1 = linear(ks[0], ks[1], 2 * in_size, hidden1)
    w2, b2 = linear(ks[2], ks[3], hidden1, hidden2)
    w3t, b3 = linear(ks[4], ks[5], hidden2, 1)
    eps = jnp.zeros((1,), jnp.float32)      # GINConv train_eps=True, init 0
    return dict(w1=w1, b1=b1, w2=w2, b2=b2, w3=w3t.T, b3=b3.reshape(1), eps=eps)


def reference_forward(node_feats, edge_idx, params, *, agg_dtype=jnp.float32,
                      precision=jax.lax.Precision.HIGHEST):
    """Pure-JAX reference mirroring the PyTorch module.  agg_dtype mirrors the
    kernel's MXU feed dtype for the neighbor aggregation (self eps term f32)."""
    N = node_feats.shape[0]
    E = edge_idx.shape[1]
    node_feats = node_feats.astype(jnp.float32)
    ef = jnp.concatenate([node_feats[edge_idx[0]], node_feats[edge_idx[1]]], 1)
    e2n = jnp.zeros((E, N), jnp.float32)
    e2n = e2n.at[jnp.arange(E), edge_idx[0]].set(1.0)
    e2n = e2n.at[jnp.arange(E), edge_idx[1]].set(1.0)
    dual = (e2n @ e2n.T) * (1.0 - jnp.eye(E))
    adj = (dual > 0).astype(jnp.float32)
    ef_agg = ef.astype(agg_dtype).astype(jnp.float32)
    # GIN: (1 + eps) * x_i + sum_{j in N(i)} x_j   (the "1" goes through the
    # aggregation dtype like in the kernel; eps * x_i stays f32).
    h = ef_agg + jnp.dot(adj, ef_agg, precision=precision) + params["eps"][0] * ef
    h = jnp.maximum(jnp.dot(h, params["w1"].T, precision=precision)
                    + params["b1"][:, 0], 0.0)
    h = jnp.maximum(jnp.dot(h, params["w2"].T, precision=precision)
                    + params["b2"][:, 0], 0.0)
    h = jnp.maximum(jnp.dot(h, params["w3"], precision=precision)
                    + params["b3"], 0.0)
    return h[:, 0]


def _check(name, out, node_feats, edge_idx, params, agg_dtype, atol, rtol):
    # Mosaic's and XLA's *default* f32 matmul precisions can legitimately
    # differ (full-f32 passes vs bf16-input single pass), so accept agreement
    # with either the exact-f32 reference or the default-precision reference.
    refs = [reference_forward(node_feats, edge_idx, params, agg_dtype=agg_dtype,
                              precision=p)
            for p in (jax.lax.Precision.HIGHEST, jax.lax.Precision.DEFAULT)]
    ok = any(bool(jnp.allclose(out, r, atol=atol, rtol=rtol)) for r in refs)
    err = min(float(jnp.max(jnp.abs(out - r))) for r in refs)
    assert ok, (name, err)


# ----------------------------------------------------------------------------
# Self-test
# ----------------------------------------------------------------------------
if __name__ == "__main__":
    key = jax.random.PRNGKey(0)
    k_feat, k_param, k_feat2, k_edge2 = jax.random.split(key, 4)

    in_size = 3
    params = init_params(k_param, in_size=in_size)

    # --- small deterministic path graph (single tile) ----------------------
    N1, E1 = 10, 8
    nf1 = jax.random.normal(k_feat, (N1, in_size), jnp.float32)
    ei1 = jnp.stack([jnp.arange(E1, dtype=jnp.int32),
                     jnp.arange(1, E1 + 1, dtype=jnp.int32)], axis=0)

    out_f32 = jax.block_until_ready(
        dual_edge_model_forward(nf1, ei1, params, agg_dtype=jnp.float32))
    assert out_f32.shape == (E1,)
    _check("path/f32", out_f32, nf1, ei1, params, jnp.float32, 1e-3, 1e-3)

    out_bf16 = jax.block_until_ready(dual_edge_model_forward(nf1, ei1, params))
    _check("path/bf16", out_bf16, nf1, ei1, params, jnp.bfloat16, 1e-3, 1e-3)

    # --- larger random graph: multi-tile reduction, resident + streamed eft -
    N2, E2 = 12, 300
    nf2 = jax.random.normal(k_feat2, (N2, in_size), jnp.float32)
    ei2 = jax.random.randint(k_edge2, (2, E2), 0, N2, dtype=jnp.int32)

    out_res = jax.block_until_ready(
        dual_edge_model_forward(nf2, ei2, params, tq=128, te=128))
    _check("rand/bf16/resident", out_res, nf2, ei2, params, jnp.bfloat16,
           5e-3, 5e-3)

    out_str = jax.block_until_ready(
        dual_edge_model_forward(nf2, ei2, params, tq=128, te=128,
                                eft_resident_budget=0))
    _check("rand/bf16/streamed", out_str, nf2, ei2, params, jnp.bfloat16,
           5e-3, 5e-3)

    print("KERNEL_OK")
</pallas_src>

<mosaic_0001>
module attributes {stable_mosaic.version = 11 : i64} {
  func.func @kernel(%arg0: i32, %arg1: i32, %arg2: memref<2x128xi32, #tpu.memory_space<vmem>>, %arg3: memref<128x2xi32, #tpu.memory_space<vmem>>, %arg4: memref<1x6x128xf32, #tpu.memory_space<vmem>>, %arg5: memref<6x128xf32, #tpu.memory_space<vmem>>, %arg6: memref<1xf32, #tpu.memory_space<smem>>, %arg7: memref<1xf32, #tpu.memory_space<smem>>, %arg8: memref<16x6xf32, #tpu.memory_space<vmem>>, %arg9: memref<16x1xf32, #tpu.memory_space<vmem>>, %arg10: memref<16x16xf32, #tpu.memory_space<vmem>>, %arg11: memref<16x1xf32, #tpu.memory_space<vmem>>, %arg12: memref<16x1xf32, #tpu.memory_space<vmem>>, %arg13: memref<1x128xf32, #tpu.memory_space<vmem>>, %arg14: memref<6x128xf32, #tpu.memory_space<vmem>>) attributes {dimension_semantics = [#tpu.dimension_semantics<parallel>, #tpu.dimension_semantics<arbitrary>], iteration_bounds = array<i64: 1, 1>, scalar_prefetch = 0 : i64, scratch_operands = 1 : i64, tpu.core_type = #tpu.core_type<tc>, window_params = [{transform_indices = @transform_0, window_bounds = array<i64: 2, 128>}, {transform_indices = @transform_1, window_bounds = array<i64: 128, 2>}, {pipeline_mode = #tpu.pipeline_mode<synchronous>, transform_indices = @transform_2, window_bounds = array<i64: 1, 6, 128>}, {transform_indices = @transform_3, window_bounds = array<i64: 6, 128>}, {transform_indices = @transform_4, window_bounds = array<i64: 1>}, {transform_indices = @transform_5, window_bounds = array<i64: 1>}, {pipeline_mode = #tpu.pipeline_mode<synchronous>, transform_indices = @transform_6, window_bounds = array<i64: 16, 6>}, {pipeline_mode = #tpu.pipeline_mode<synchronous>, transform_indices = @transform_7, window_bounds = array<i64: 16, 1>}, {pipeline_mode = #tpu.pipeline_mode<synchronous>, transform_indices = @transform_8, window_bounds = array<i64: 16, 16>}, {pipeline_mode = #tpu.pipeline_mode<synchronous>, transform_indices = @transform_9, window_bounds = array<i64: 16, 1>}, {pipeline_mode = #tpu.pipeline_mode<synchronous>, transform_indices = @transform_10, window_bounds = array<i64: 16, 1>}, {transform_indices = @transform_11, window_bounds = array<i64: 1, 128>}]} {
    %c0_i32 = arith.constant 0 : i32
    %0 = arith.cmpi eq, %arg1, %c0_i32 : i32
    %1 = arith.extui %0 : i1 to i32
    %c0_i32_0 = arith.constant 0 : i32
    %2 = arith.cmpi ne, %1, %c0_i32_0 : i32
    scf.if %2 {
      %cst_15 = arith.constant 0.000000e+00 : f32
      %34 = vector.broadcast %cst_15 : f32 to vector<6x128xf32>
      %c0_16 = arith.constant 0 : index
      %c0_17 = arith.constant 0 : index
      %35 = vector.load %arg14[%c0_16, %c0_17] : memref<6x128xf32, #tpu.memory_space<vmem>>, vector<6x128xf32>
      tpu.vector_store %arg14[%c0_16, %c0_17], %34 {strides = array<i32>} : memref<6x128xf32, #tpu.memory_space<vmem>>, vector<6x128xf32>,
    } else {
    }
    %c0 = arith.constant 0 : index
    %c0_1 = arith.constant 0 : index
    %3 = vector.load %arg2[%c0, %c0_1] : memref<2x128xi32, #tpu.memory_space<vmem>>, vector<1x128xi32>
    %c1 = arith.constant 1 : index
    %c0_2 = arith.constant 0 : index
    %4 = vector.load %arg2[%c1, %c0_2] : memref<2x128xi32, #tpu.memory_space<vmem>>, vector<1x128xi32>
    %c0_3 = arith.constant 0 : index
    %c0_4 = arith.constant 0 : index
    %5 = vector.load %arg3[%c0_3, %c0_4] : memref<128x2xi32, #tpu.memory_space<vmem>>, vector<128x1xi32>
    %c0_5 = arith.constant 0 : index
    %c1_6 = arith.constant 1 : index
    %6 = vector.load %arg3[%c0_5, %c1_6] : memref<128x2xi32, #tpu.memory_space<vmem>>, vector<128x1xi32>
    %7 = vector.broadcast %5 : vector<128x1xi32> to vector<128x128xi32>
    %8 = vector.broadcast %3 : vector<1x128xi32> to vector<128x128xi32>
    %9 = arith.cmpi eq, %7, %8 : vector<128x128xi32>
    %10 = vector.broadcast %5 : vector<128x1xi32> to vector<128x128xi32>
    %11 = vector.broadcast %4 : vector<1x128xi32> to vector<128x128xi32>
    %12 = arith.cmpi eq, %10, %11 : vector<128x128xi32>
    %13 = arith.ori %9, %12 : vector<128x128xi1>
    %14 = vector.broadcast %6 : vector<128x1xi32> to vector<128x128xi32>
    %15 = vector.broadcast %3 : vector<1x128xi32> to vector<128x128xi32>
    %16 = arith.cmpi eq, %14, %15 : vector<128x128xi32>
    %17 = arith.ori %13, %16 : vector<128x128xi1>
    %18 = vector.broadcast %6 : vector<128x1xi32> to vector<128x128xi32>
    %19 = vector.broadcast %4 : vector<1x128xi32> to vector<128x128xi32>
    %20 = arith.cmpi eq, %18, %19 : vector<128x128xi32>
    %21 = arith.ori %17, %20 : vector<128x128xi1>
    %22 = arith.index_cast %arg1 : i32 to index
    %c0_7 = arith.constant 0 : index
    %c0_8 = arith.constant 0 : index
    %23 = vector.load %arg4[%22, %c0_7, %c0_8] : memref<1x6x128xf32, #tpu.memory_space<vmem>>, vector<1x6x128xf32>
    %24 = vector.shape_cast %23 : vector<1x6x128xf32> to vector<6x128xf32>
    %25 = arith.extui %21 : vector<128x128xi1> to vector<128x128xi32>
    %26 = arith.sitofp %25 : vector<128x128xi32> to vector<128x128xf32>
    %c0_9 = arith.constant 0 : index
    %c0_10 = arith.constant 0 : index
    %27 = vector.load %arg14[%c0_9, %c0_10] : memref<6x128xf32, #tpu.memory_space<vmem>>, vector<6x128xf32>
    %cst = arith.constant dense<0.000000e+00> : vector<6x128xf32>
    %28 = tpu.matmul %24, %26, %cst {dimension_numbers = #tpu.dot_dimension_numbers<[1], [0], [0], [1], [0, 0, 1, 1], [], []>} : vector<6x128xf32>, vector<128x128xf32>, vector<6x128xf32> -> vector<6x128xf32>
    %29 = arith.addf %27, %28 : vector<6x128xf32>
    %c0_11 = arith.constant 0 : index
    %c0_12 = arith.constant 0 : index
    %30 = vector.load %arg14[%c0_11, %c0_12] : memref<6x128xf32, #tpu.memory_space<vmem>>, vector<6x128xf32>
    tpu.vector_store %arg14[%c0_11, %c0_12], %29 {strides = array<i32>} : memref<6x128xf32, #tpu.memory_space<vmem>>, vector<6x128xf32>,
    %c0_i32_13 = arith.constant 0 : i32
    %31 = arith.cmpi eq, %arg1, %c0_i32_13 : i32
    %32 = arith.extui %31 : i1 to i32
    %c0_i32_14 = arith.constant 0 : i32
    %33 = arith.cmpi ne, %32, %c0_i32_14 : i32
    scf.if %33 {
      %c0_15 = arith.constant 0 : index
      %34 = memref.load %arg6[%c0_15] : memref<1xf32, #tpu.memory_space<smem>>
      %c0_16 = arith.constant 0 : index
      %c0_17 = arith.constant 0 : index
      %35 = vector.load %arg14[%c0_16, %c0_17] : memref<6x128xf32, #tpu.memory_space<vmem>>, vector<6x128xf32>
      %c0_18 = arith.constant 0 : index
      %c0_19 = arith.constant 0 : index
      %36 = vector.load %arg5[%c0_18, %c0_19] : memref<6x128xf32, #tpu.memory_space<vmem>>, vector<6x128xf32>
      %37 = vector.broadcast %34 : f32 to vector<6x128xf32>
      %38 = arith.mulf %37, %36 : vector<6x128xf32>
      %39 = arith.addf %35, %38 : vector<6x128xf32>
      %c0_20 = arith.constant 0 : index
      %c0_21 = arith.constant 0 : index
      %40 = vector.load %arg8[%c0_20, %c0_21] : memref<16x6xf32, #tpu.memory_space<vmem>>, vector<16x6xf32>
      %cst_22 = arith.constant dense<0.000000e+00> : vector<16x128xf32>
      %41 = tpu.matmul %40, %39, %cst_22 {dimension_numbers = #tpu.dot_dimension_numbers<[1], [0], [0], [1], [0, 0, 1, 1], [], []>} : vector<16x6xf32>, vector<6x128xf32>, vector<16x128xf32> -> vector<16x128xf32>
      %c0_23 = arith.constant 0 : index
      %c0_24 = arith.constant 0 : index
      %42 = vector.load %arg9[%c0_23, %c0_24] : memref<16x1xf32, #tpu.memory_space<vmem>>, vector<16x1xf32>
      %43 = vector.broadcast %42 : vector<16x1xf32> to vector<16x128xf32>
      %44 = arith.addf %41, %43 : vector<16x128xf32>
      %cst_25 = arith.constant 0.000000e+00 : f32
      %45 = vector.broadcast %cst_25 : f32 to vector<16x128xf32>
      %46 = arith.maximumf %44, %45 : vector<16x128xf32>
      %c0_26 = arith.constant 0 : index
      %c0_27 = arith.constant 0 : index
      %47 = vector.load %arg10[%c0_26, %c0_27] : memref<16x16xf32, #tpu.memory_space<vmem>>, vector<16x16xf32>
      %cst_28 = arith.constant dense<0.000000e+00> : vector<16x128xf32>
      %48 = tpu.matmul %47, %46, %cst_28 {dimension_numbers = #tpu.dot_dimension_numbers<[1], [0], [0], [1], [0, 0, 1, 1], [], []>} : vector<16x16xf32>, vector<16x128xf32>, vector<16x128xf32> -> vector<16x128xf32>
      %c0_29 = arith.constant 0 : index
      %c0_30 = arith.constant 0 : index
      %49 = vector.load %arg11[%c0_29, %c0_30] : memref<16x1xf32, #tpu.memory_space<vmem>>, vector<16x1xf32>
      %50 = vector.broadcast %49 : vector<16x1xf32> to vector<16x128xf32>
      %51 = arith.addf %48, %50 : vector<16x128xf32>
      %cst_31 = arith.constant 0.000000e+00 : f32
      %52 = vector.broadcast %cst_31 : f32 to vector<16x128xf32>
      %53 = arith.maximumf %51, %52 : vector<16x128xf32>
      %c0_32 = arith.constant 0 : index
      %c0_33 = arith.constant 0 : index
      %54 = vector.load %arg12[%c0_32, %c0_33] : memref<16x1xf32, #tpu.memory_space<vmem>>, vector<16x1xf32>
      %55 = vector.broadcast %54 : vector<16x1xf32> to vector<16x128xf32>
      %56 = arith.mulf %55, %53 : vector<16x128xf32>
      %cst_34 = arith.constant dense<0.000000e+00> : vector<128xf32>
      %57 = vector.multi_reduction <add>, %56, %cst_34 [0] : vector<16x128xf32> to vector<128xf32>
      %58 = vector.shape_cast %57 : vector<128xf32> to vector<1x128xf32>
      %c0_35 = arith.constant 0 : index
      %59 = memref.load %arg7[%c0_35] : memref<1xf32, #tpu.memory_space<smem>>
      %60 = vector.broadcast %59 : f32 to vector<1x128xf32>
      %61 = arith.addf %58, %60 : vector<1x128xf32>
      %cst_36 = arith.constant 0.000000e+00 : f32
      %62 = vector.broadcast %cst_36 : f32 to vector<1x128xf32>
      %63 = arith.maximumf %61, %62 : vector<1x128xf32>
      %c0_37 = arith.constant 0 : index
      %c0_38 = arith.constant 0 : index
      %64 = vector.load %arg13[%c0_37, %c0_38] : memref<1x128xf32, #tpu.memory_space<vmem>>, vector<1x128xf32>
      tpu.vector_store %arg13[%c0_37, %c0_38], %63 {strides = array<i32>} : memref<1x128xf32, #tpu.memory_space<vmem>>, vector<1x128xf32>,
    } else {
    }
    return
  }
  func.func @transform_0(%arg0: i32, %arg1: i32) -> (i32, i32) {
    %c0_i32 = arith.constant 0 : i32
    %c0_i32_0 = arith.constant 0 : i32
    return %c0_i32, %arg0 : i32, i32
  }
  func.func @transform_1(%arg0: i32, %arg1: i32) -> (i32, i32) {
    %c0_i32 = arith.constant 0 : i32
    %c0_i32_0 = arith.constant 0 : i32
    return %arg1, %c0_i32 : i32, i32
  }
  func.func @transform_2(%arg0: i32, %arg1: i32) -> (i32, i32, i32) {
    %c0_i32 = arith.constant 0 : i32
    %c0_i32_0 = arith.constant 0 : i32
    %c0_i32_1 = arith.constant 0 : i32
    %c0_i32_2 = arith.constant 0 : i32
    return %c0_i32, %c0_i32_0, %c0_i32_1 : i32, i32, i32
  }
  func.func @transform_3(%arg0: i32, %arg1: i32) -> (i32, i32) {
    %c0_i32 = arith.constant 0 : i32
    %c0_i32_0 = arith.constant 0 : i32
    return %c0_i32, %arg0 : i32, i32
  }
  func.func @transform_4(%arg0: i32, %arg1: i32) -> i32 {
    %c0_i32 = arith.constant 0 : i32
    %c0_i32_0 = arith.constant 0 : i32
    return %c0_i32 : i32
  }
  func.func @transform_5(%arg0: i32, %arg1: i32) -> i32 {
    %c0_i32 = arith.constant 0 : i32
    %c0_i32_0 = arith.constant 0 : i32
    return %c0_i32 : i32
  }
  func.func @transform_6(%arg0: i32, %arg1: i32) -> (i32, i32) {
    %c0_i32 = arith.constant 0 : i32
    %c0_i32_0 = arith.constant 0 : i32
    %c0_i32_1 = arith.constant 0 : i32
    return %c0_i32, %c0_i32_0 : i32, i32
  }
  func.func @transform_7(%arg0: i32, %arg1: i32) -> (i32, i32) {
    %c0_i32 = arith.constant 0 : i32
    %c0_i32_0 = arith.constant 0 : i32
    %c0_i32_1 = arith.constant 0 : i32
    return %c0_i32, %c0_i32_0 : i32, i32
  }
  func.func @transform_8(%arg0: i32, %arg1: i32) -> (i32, i32) {
    %c0_i32 = arith.constant 0 : i32
    %c0_i32_0 = arith.constant 0 : i32
    %c0_i32_1 = arith.constant 0 : i32
    return %c0_i32, %c0_i32_0 : i32, i32
  }
  func.func @transform_9(%arg0: i32, %arg1: i32) -> (i32, i32) {
    %c0_i32 = arith.constant 0 : i32
    %c0_i32_0 = arith.constant 0 : i32
    %c0_i32_1 = arith.constant 0 : i32
    return %c0_i32, %c0_i32_0 : i32, i32
  }
  func.func @transform_10(%arg0: i32, %arg1: i32) -> (i32, i32) {
    %c0_i32 = arith.constant 0 : i32
    %c0_i32_0 = arith.constant 0 : i32
    %c0_i32_1 = arith.constant 0 : i32
    return %c0_i32, %c0_i32_0 : i32, i32
  }
  func.func @transform_11(%arg0: i32, %arg1: i32) -> (i32, i32) {
    %c0_i32 = arith.constant 0 : i32
    %c0_i32_0 = arith.constant 0 : i32
    return %c0_i32, %arg0 : i32, i32
  }
}

</mosaic_0001>

<bundles_post_ra>
// kernel: tpu_custom_call.1
= control target key start
LH: loop header
LB: loop body
LE: loop exit
PB: predicated region body
PF: predicated region fallthrough
CT: control target
= control target key end

     0   :  { %v781_v2 = vmov 0   ;;  %v782_v3 = vmov 0.0   ;;  %v783_v4 = vmov 1   ;;  %s1050_s0 = inlined_call_operand.vmem [shape: s32[2,128], index: 0, kind: input, shape index: {}]   ;;  %s1051_s1 = inlined_call_operand.vmem [shape: s32[128,2], index: 1, kind: input, shape index: {}]   ;;  %s1052_s2 = inlined_call_operand.vmem [shape: f32[1,6,128], index: 2, kind: input, shape index: {}]   ;;  %s1053_s3 = inlined_call_operand.vmem [shape: f32[6,128], index: 3, kind: input, shape index: {}]   ;;  %s1054_s4 = inlined_call_operand.<no memory space> [shape: f32[1], index: 4, kind: input, shape index: {}]   ;;  %s1055_s5 = inlined_call_operand.<no memory space> [shape: f32[1], index: 5, kind: input, shape index: {}]   ;;  %s1056_s6 = inlined_call_operand.vmem [shape: f32[16,6], index: 6, kind: input, shape index: {}]   ;;  %s1057_s7 = inlined_call_operand.vmem [shape: f32[16,1], index: 7, kind: input, shape index: {}]   ;;  %s1058_s8 = inlined_call_operand.vmem [shape: f32[16,16], index: 8, kind: input, shape index: {}]   ;;  %s1059_s9 = inlined_call_operand.vmem [shape: f32[16,1], index: 9, kind: input, shape index: {}]   ;;  %s1060_s10 = inlined_call_operand.vmem [shape: f32[16,1], index: 10, kind: input, shape index: {}]   ;;  %s1061_s11 = inlined_call_operand.hbm [shape: f32[1,128], index: 11, kind: output, shape index: {}]  }
   0x1   :  { %v63_v0 = vld [vmem:[%s1051_s1 + $0x78] sm:$0xff]  ;;  %v62_v1 = vld [vmem:[%s1051_s1 + $0x70] sm:$0xff]  ;;  %755 = vset.pattern.permute.xlu1 %v781_v2  ;;  %753 = vset.pattern.permute.xlu0 %v781_v2  ;;  %45 = vst [vmem:[#allocation2] sm:$0x3f] %v782_v3 }
   0x2   :  { %110 = vperm.xlu0 %753, %v63_v0   ;;  %107 = vperm.xlu1 %755, %v62_v1  }
   0x3   :  { %700 = vmatprep.subr.mxu0 %v782_v3 }
   0x6   :  { %754 = vset.pattern.permute.xlu0 %v783_v4  ;;  %756 = vset.pattern.permute.xlu1 %v783_v4 }
   0x7   :  { %214 = vperm.xlu0 %754, %v63_v0   ;;  %211 = vperm.xlu1 %756, %v62_v1  }
   0x8   :  { %18 = vsyncpa [#allocation6], 0  ;;  %v61_v5 = vld [vmem:[%s1051_s1 + $0x68] sm:$0xff]  ;;  %v60_v6 = vld [vmem:[%s1051_s1 + $0x60] sm:$0xff]  ;;  %vm784_vm0 = vmmov 0   ;;  %v785_v31 = vmov 1.0  }
   0x9   :  { %v59_v7 = vld [vmem:[%s1051_s1 + $0x58] sm:$0xff]  ;;  %v58_v8 = vld [vmem:[%s1051_s1 + $0x50] sm:$0xff]  ;;  %v57_v9 = vld [vmem:[%s1051_s1 + $0x48] sm:$0xff]  ;;  %732 = vmatprep.mubr.msk.f32.mxu0 %vm784_vm0, %v782_v3  ;;  %s786_s14 = smov [#allocation5]  }
   0xa   :  { %v56_v10 = vld [vmem:[%s1051_s1 + $0x40] sm:$0xff]  ;;  %v55_v11 = vld [vmem:[%s1051_s1 + $0x38] sm:$0xff]  ;;  %v54_v12 = vld [vmem:[%s1051_s1 + $0x30] sm:$0xff]  ;;  %s629_s15 = sshll.u32 %s786_s14, 4  ;;  %s630_s15 = int_to_ptr.vmem [resolvable:$true] %s629_s15 }
   0xb   :  { %757 = vset.pattern.permute.xlu1 %v781_v2  ;;  %208 = vperm.xlu0 %754, %v61_v5   ;;  %v53_v13 = vld [vmem:[%s1051_s1 + $0x28] sm:$0xff]  ;;  %v52_v14 = vld [vmem:[%s1051_s1 + $0x20] sm:$0xff]  ;;  %v51_v15 = vld [vmem:[%s1051_s1 + $0x18] sm:$0xff]  ;;  %s759_s16 = scalar_lea.vmem %s630_s15, 16  ;;  %p764_p1 = scmp.lt.s32.totalorder %s630_s15, %s630_s15 }
   0xc   :  { %104 = vperm.xlu1 %757, %v61_v5   ;;  %v50_v16 = vld [vmem:[%s1051_s1 + $0x10] sm:$0xff]  ;;  %v49_v17 = vld [vmem:[%s1051_s1 + $0x8] sm:$0xff]  ;;  %v48_v18 = vld [vmem:[%s1051_s1] sm:$0xff]  ;;  %p760_p0 = scmp.ne.s32.totalorder %s630_s15, %s759_s16  ;;  %s763_s1 = scalar_lea.vmem %s630_s15, 32 }
   0xd   :  { %v400_v19 = vld [vmem:[%s1057_s7 + $0x8] sm:$0xff]  ;;  %v501_v20 = vld [vmem:[%s1059_s9] sm:$0xff]  ;;  %p765_p2 = scmp.lt.s32.totalorder %s763_s1, %s759_s16 }
   0xe   :  { %v502_v21 = vld [vmem:[%s1059_s9 + $0x8] sm:$0xff]  ;;  %v913_v24 = vld [vmem:[%s1050_s0] ss:$0 sm:$0xff]  ;;  %v918_v25 = vld [vmem:[%s1050_s0 + $0x1] ss:$0 sm:$0xff] }
   0xf   :  { %205 = vperm.xlu0 %754, %v60_v6   ;;  %v598_v22 = vld [vmem:[%s1060_s10 + $0x8] sm:$0xff]  ;;  %v282_v58 = vld [vmem:[%s1052_s2] sm:$0x3f]  ;;  %p766_p3 = por %p765_p2, %p764_p1 }
  0x10   :  { %101 = vperm.xlu1 %757, %v60_v6   ;;  %v397_v59 = vld [vmem:[%s1056_s6] sm:$0xff] }
  0x11   :  { %v399_v60 = vld [vmem:[%s1057_s7] sm:$0xff]  ;;  %p767_p4 = pnand %p766_p3, %p760_p0 }
  0x12   :  { %v597_v61 = vld [vmem:[%s1060_s10] sm:$0xff] }
  0x13   :  { %202 = vperm.xlu0 %754, %v59_v7   ;;  %v315_v62 = vld [vmem:[#allocation2] sm:$0x3f] }
  0x14   :  { %98 = vperm.xlu1 %757, %v59_v7   ;;  %v398_v7 = vld [vmem:[%s1056_s6 + $0x8] sm:$0xff] }
  0x17   :  { %199 = vperm.xlu0 %754, %v58_v8  }
  0x18   :  { %95 = vperm.xlu1 %757, %v58_v8   ;;  %v499_v8 = vld [vmem:[%s1058_s8] sm:$0xff] }
  0x1b   :  { %196 = vperm.xlu0 %754, %v57_v9  }
  0x1c   :  { %92 = vperm.xlu1 %757, %v57_v9  }
  0x1f   :  { %193 = vperm.xlu0 %754, %v56_v10  }
  0x20   :  { %89 = vperm.xlu1 %757, %v56_v10  }
  0x23   :  { %190 = vperm.xlu0 %754, %v55_v11  }
  0x24   :  { %86 = vperm.xlu1 %757, %v55_v11  }
  0x27   :  { %187 = vperm.xlu0 %754, %v54_v12  }
  0x28   :  { %83 = vperm.xlu1 %757, %v54_v12  }
  0x2b   :  { %184 = vperm.xlu0 %754, %v53_v13  }
  0x2c   :  { %80 = vperm.xlu1 %757, %v53_v13  }
  0x2f   :  { %181 = vperm.xlu0 %754, %v52_v14  }
  0x30   :  { %77 = vperm.xlu1 %757, %v52_v14  }
  0x33   :  { %178 = vperm.xlu0 %754, %v51_v15  }
  0x34   :  { %74 = vperm.xlu1 %757, %v51_v15  }
  0x37   :  { %175 = vperm.xlu0 %754, %v50_v16  }
  0x38   :  { %71 = vperm.xlu1 %757, %v50_v16  }
  0x3b   :  { %172 = vperm.xlu0 %754, %v49_v17  }
  0x3c   :  { %68 = vperm.xlu1 %757, %v49_v17   ;;  %v500_v17 = vld [vmem:[%s1058_s8 + $0x8] sm:$0xff] }
  0x3f   :  { %169 = vperm.xlu0 %754, %v48_v18  }
  0x40   :  { %65 = vperm.xlu1 %757, %v48_v18  }
  0x43   :  { %758 = vset.pattern.permute.xlu0 %v781_v2  ;;  %v393_v2 = vld [vmem:[%s1053_s3] sm:$0x3f] }
  0x44   :  { %408 = vperm.xlu1 %757, %v400_v19   ;;  %403 = vperm.xlu0 %758, %v399_v60  }
  0x48   :  { %505 = vperm.xlu1 %757, %v501_v20   ;;  %601 = vperm.xlu0 %758, %v597_v61  }
  0x4c   :  { %510 = vperm.xlu1 %757, %v502_v21  }
  0x50   :  { %606 = vperm.xlu1 %757, %v598_v22  }
  0x7d   :  { %v108_v23 = vpop.permute.xlu1 %107  ;;  %v111_v26 = vpop.permute.xlu0 %110 }
  0x7e   :  { %vm130_vm1 = vcmp.eq.s32.totalorder %v108_v23, %v913_v24  ;;  %vm150_vm2 = vcmp.eq.s32.totalorder %v108_v23, %v918_v25  ;;  %vm131_vm3 = vcmp.eq.s32.totalorder %v111_v26, %v913_v24  ;;  %vm151_vm4 = vcmp.eq.s32.totalorder %v111_v26, %v918_v25 }
  0x7f   :  { %vm166_vm5 = vmor %vm130_vm1, %vm150_vm2 }
  0x80   :  { %vm167_vm8 = vmor %vm131_vm3, %vm151_vm4 }
  0x82   :  { %v215_v27 = vpop.permute.xlu0 %214  ;;  %v212_v28 = vpop.permute.xlu1 %211 }
  0x83   :  { %vm231_vm6 = vcmp.eq.s32.totalorder %v215_v27, %v913_v24  ;;  %vm230_vm7 = vcmp.eq.s32.totalorder %v212_v28, %v913_v24  ;;  %vm263_vm9 = vcmp.eq.s32.totalorder %v215_v27, %v918_v25  ;;  %vm262_vm11 = vcmp.eq.s32.totalorder %v212_v28, %v918_v25 }
  0x84   :  { %vm246_vm10 = vmor %vm166_vm5, %vm230_vm7 }
  0x85   :  { %vm247_vm12 = vmor %vm167_vm8, %vm231_vm6 }
  0x86   :  { %v209_v29 = vpop.permute.xlu0 %208  ;;  %vm279_vm13 = vmor %vm247_vm12, %vm263_vm9 }
  0x87   :  { %v105_v30 = vpop.permute.xlu1 %104  ;;  %vm278_vm14 = vmor %vm246_vm10, %vm262_vm11  ;;  %701 = vmatpush3.msk.msra.mxu0 %vm279_vm13, %v785_v31  ;;  %vm229_vm1 = vcmp.eq.s32.totalorder %v209_v29, %v913_v24  ;;  %vm261_vm3 = vcmp.eq.s32.totalorder %v209_v29, %v918_v25 }
  0x88   :  { %vm129_vm15 = vcmp.eq.s32.totalorder %v105_v30, %v913_v24  ;;  %vm149_vm0 = vcmp.eq.s32.totalorder %v105_v30, %v918_v25  ;;  %702 = vmatprep.subr.mxu0 %v782_v3 }
  0x89   :  { %vm165_vm2 = vmor %vm129_vm15, %vm149_vm0  ;;  %703 = vmatpush3.msk.msra.mxu0 %vm278_vm14, %v785_v31 }
  0x8a   :  { %vm245_vm4 = vmor %vm165_vm2, %vm229_vm1  ;;  %v206_v32 = vpop.permute.xlu0 %205  ;;  %704 = vmatprep.subr.mxu0 %v782_v3 }
  0x8b   :  { %v102_v33 = vpop.permute.xlu1 %101  ;;  %vm277_vm5 = vmor %vm245_vm4, %vm261_vm3  ;;  %vm228_vm8 = vcmp.eq.s32.totalorder %v206_v32, %v913_v24  ;;  %vm260_vm10 = vcmp.eq.s32.totalorder %v206_v32, %v918_v25 }
  0x8c   :  { %vm128_vm6 = vcmp.eq.s32.totalorder %v102_v33, %v913_v24  ;;  %vm148_vm7 = vcmp.eq.s32.totalorder %v102_v33, %v918_v25  ;;  %705 = vmatpush3.msk.msra.mxu0 %vm277_vm5, %v785_v31 }
  0x8d   :  { %vm164_vm9 = vmor %vm128_vm6, %vm148_vm7  ;;  %706 = vmatprep.subr.mxu0 %v782_v3 }
  0x8e   :  { %vm244_vm11 = vmor %vm164_vm9, %vm228_vm8  ;;  %v203_v34 = vpop.permute.xlu0 %202 }
  0x8f   :  { %v99_v35 = vpop.permute.xlu1 %98  ;;  %vm276_vm12 = vmor %vm244_vm11, %vm260_vm10  ;;  %vm227_vm15 = vcmp.eq.s32.totalorder %v203_v34, %v913_v24  ;;  %vm259_vm1 = vcmp.eq.s32.totalorder %v203_v34, %v918_v25 }
  0x90   :  { %vm127_vm13 = vcmp.eq.s32.totalorder %v99_v35, %v913_v24  ;;  %vm147_vm14 = vcmp.eq.s32.totalorder %v99_v35, %v918_v25  ;;  %707 = vmatpush3.msk.msra.mxu0 %vm276_vm12, %v785_v31 }
  0x91   :  { %vm163_vm0 = vmor %vm127_vm13, %vm147_vm14  ;;  %708 = vmatprep.subr.mxu0 %v782_v3 }
  0x92   :  { %vm243_vm2 = vmor %vm163_vm0, %vm227_vm15  ;;  %v200_v36 = vpop.permute.xlu0 %199 }
  0x93   :  { %v96_v37 = vpop.permute.xlu1 %95  ;;  %vm275_vm3 = vmor %vm243_vm2, %vm259_vm1  ;;  %vm226_vm6 = vcmp.eq.s32.totalorder %v200_v36, %v913_v24  ;;  %vm258_vm8 = vcmp.eq.s32.totalorder %v200_v36, %v918_v25  ;;  %v619_v36 = vstv %s1055_s5 }
  0x94   :  { %vm126_vm4 = vcmp.eq.s32.totalorder %v96_v37, %v913_v24  ;;  %vm146_vm5 = vcmp.eq.s32.totalorder %v96_v37, %v918_v25  ;;  %709 = vmatpush3.msk.msra.mxu0 %vm275_vm3, %v785_v31 }
  0x95   :  { %vm162_vm7 = vmor %vm126_vm4, %vm146_vm5  ;;  %710 = vmatprep.subr.mxu0 %v782_v3 }
  0x96   :  { %vm242_vm9 = vmor %vm162_vm7, %vm226_vm6  ;;  %v197_v38 = vpop.permute.xlu0 %196 }
  0x97   :  { %v93_v39 = vpop.permute.xlu1 %92  ;;  %vm274_vm10 = vmor %vm242_vm9, %vm258_vm8  ;;  %vm225_vm13 = vcmp.eq.s32.totalorder %v197_v38, %v913_v24  ;;  %vm257_vm15 = vcmp.eq.s32.totalorder %v197_v38, %v918_v25 }
  0x98   :  { %vm125_vm11 = vcmp.eq.s32.totalorder %v93_v39, %v913_v24  ;;  %vm145_vm12 = vcmp.eq.s32.totalorder %v93_v39, %v918_v25  ;;  %711 = vmatpush3.msk.msra.mxu0 %vm274_vm10, %v785_v31 }
  0x99   :  { %vm161_vm14 = vmor %vm125_vm11, %vm145_vm12  ;;  %712 = vmatprep.subr.mxu0 %v782_v3 }
  0x9a   :  { %vm241_vm0 = vmor %vm161_vm14, %vm225_vm13  ;;  %v194_v40 = vpop.permute.xlu0 %193 }
  0x9b   :  { %v90_v41 = vpop.permute.xlu1 %89  ;;  %vm273_vm1 = vmor %vm241_vm0, %vm257_vm15  ;;  %vm224_vm4 = vcmp.eq.s32.totalorder %v194_v40, %v913_v24  ;;  %vm256_vm6 = vcmp.eq.s32.totalorder %v194_v40, %v918_v25 }
  0x9c   :  { %vm124_vm2 = vcmp.eq.s32.totalorder %v90_v41, %v913_v24  ;;  %vm144_vm3 = vcmp.eq.s32.totalorder %v90_v41, %v918_v25  ;;  %713 = vmatpush3.msk.msra.mxu0 %vm273_vm1, %v785_v31 }
  0x9d   :  { %vm160_vm5 = vmor %vm124_vm2, %vm144_vm3  ;;  %714 = vmatprep.subr.mxu0 %v782_v3 }
  0x9e   :  { %vm240_vm7 = vmor %vm160_vm5, %vm224_vm4  ;;  %v191_v42 = vpop.permute.xlu0 %190 }
  0x9f   :  { %v87_v43 = vpop.permute.xlu1 %86  ;;  %vm272_vm8 = vmor %vm240_vm7, %vm256_vm6  ;;  %vm223_vm11 = vcmp.eq.s32.totalorder %v191_v42, %v913_v24  ;;  %vm255_vm13 = vcmp.eq.s32.totalorder %v191_v42, %v918_v25 }
  0xa0   :  { %vm123_vm9 = vcmp.eq.s32.totalorder %v87_v43, %v913_v24  ;;  %vm143_vm10 = vcmp.eq.s32.totalorder %v87_v43, %v918_v25  ;;  %715 = vmatpush3.msk.msra.mxu0 %vm272_vm8, %v785_v31 }
  0xa1   :  { %vm159_vm12 = vmor %vm123_vm9, %vm143_vm10  ;;  %716 = vmatprep.subr.mxu0 %v782_v3 }
  0xa2   :  { %vm239_vm14 = vmor %vm159_vm12, %vm223_vm11  ;;  %v188_v44 = vpop.permute.xlu0 %187 }
  0xa3   :  { %v84_v45 = vpop.permute.xlu1 %83  ;;  %vm271_vm15 = vmor %vm239_vm14, %vm255_vm13  ;;  %vm222_vm2 = vcmp.eq.s32.totalorder %v188_v44, %v913_v24  ;;  %vm254_vm4 = vcmp.eq.s32.totalorder %v188_v44, %v918_v25 }
  0xa4   :  { %vm122_vm0 = vcmp.eq.s32.totalorder %v84_v45, %v913_v24  ;;  %vm142_vm1 = vcmp.eq.s32.totalorder %v84_v45, %v918_v25  ;;  %717 = vmatpush3.msk.msra.mxu0 %vm271_vm15, %v785_v31 }
  0xa5   :  { %vm158_vm3 = vmor %vm122_vm0, %vm142_vm1  ;;  %718 = vmatprep.subr.mxu0 %v782_v3 }
  0xa6   :  { %vm238_vm5 = vmor %vm158_vm3, %vm222_vm2  ;;  %v185_v46 = vpop.permute.xlu0 %184 }
  0xa7   :  { %v81_v47 = vpop.permute.xlu1 %80  ;;  %vm270_vm6 = vmor %vm238_vm5, %vm254_vm4  ;;  %vm221_vm9 = vcmp.eq.s32.totalorder %v185_v46, %v913_v24  ;;  %vm253_vm11 = vcmp.eq.s32.totalorder %v185_v46, %v918_v25 }
  0xa8   :  { %vm121_vm7 = vcmp.eq.s32.totalorder %v81_v47, %v913_v24  ;;  %vm141_vm8 = vcmp.eq.s32.totalorder %v81_v47, %v918_v25  ;;  %719 = vmatpush3.msk.msra.mxu0 %vm270_vm6, %v785_v31 }
  0xa9   :  { %vm157_vm10 = vmor %vm121_vm7, %vm141_vm8  ;;  %720 = vmatprep.subr.mxu0 %v782_v3 }
  0xaa   :  { %vm237_vm12 = vmor %vm157_vm10, %vm221_vm9  ;;  %v182_v48 = vpop.permute.xlu0 %181 }
  0xab   :  { %v78_v49 = vpop.permute.xlu1 %77  ;;  %vm269_vm13 = vmor %vm237_vm12, %vm253_vm11  ;;  %vm220_vm0 = vcmp.eq.s32.totalorder %v182_v48, %v913_v24  ;;  %vm252_vm2 = vcmp.eq.s32.totalorder %v182_v48, %v918_v25 }
  0xac   :  { %vm120_vm14 = vcmp.eq.s32.totalorder %v78_v49, %v913_v24  ;;  %vm140_vm15 = vcmp.eq.s32.totalorder %v78_v49, %v918_v25  ;;  %721 = vmatpush3.msk.msra.mxu0 %vm269_vm13, %v785_v31 }
  0xad   :  { %vm156_vm1 = vmor %vm120_vm14, %vm140_vm15  ;;  %722 = vmatprep.subr.mxu0 %v782_v3 }
  0xae   :  { %vm236_vm3 = vmor %vm156_vm1, %vm220_vm0  ;;  %v179_v50 = vpop.permute.xlu0 %178 }
  0xaf   :  { %v75_v51 = vpop.permute.xlu1 %74  ;;  %vm268_vm4 = vmor %vm236_vm3, %vm252_vm2  ;;  %vm219_vm7 = vcmp.eq.s32.totalorder %v179_v50, %v913_v24  ;;  %vm251_vm9 = vcmp.eq.s32.totalorder %v179_v50, %v918_v25 }
  0xb0   :  { %vm119_vm5 = vcmp.eq.s32.totalorder %v75_v51, %v913_v24  ;;  %vm139_vm6 = vcmp.eq.s32.totalorder %v75_v51, %v918_v25  ;;  %723 = vmatpush3.msk.msra.mxu0 %vm268_vm4, %v785_v31 }
  0xb1   :  { %vm155_vm8 = vmor %vm119_vm5, %vm139_vm6  ;;  %724 = vmatprep.subr.mxu0 %v782_v3 }
  0xb2   :  { %vm235_vm10 = vmor %vm155_vm8, %vm219_vm7  ;;  %v176_v52 = vpop.permute.xlu0 %175 }
  0xb3   :  { %v72_v53 = vpop.permute.xlu1 %71  ;;  %vm267_vm11 = vmor %vm235_vm10, %vm251_vm9  ;;  %vm218_vm14 = vcmp.eq.s32.totalorder %v176_v52, %v913_v24  ;;  %vm250_vm0 = vcmp.eq.s32.totalorder %v176_v52, %v918_v25 }
  0xb4   :  { %vm118_vm12 = vcmp.eq.s32.totalorder %v72_v53, %v913_v24  ;;  %vm138_vm13 = vcmp.eq.s32.totalorder %v72_v53, %v918_v25  ;;  %725 = vmatpush3.msk.msra.mxu0 %vm267_vm11, %v785_v31 }
  0xb5   :  { %vm154_vm15 = vmor %vm118_vm12, %vm138_vm13  ;;  %726 = vmatprep.subr.mxu0 %v782_v3 }
  0xb6   :  { %vm234_vm1 = vmor %vm154_vm15, %vm218_vm14  ;;  %v173_v54 = vpop.permute.xlu0 %172 }
  0xb7   :  { %v69_v55 = vpop.permute.xlu1 %68  ;;  %vm266_vm2 = vmor %vm234_vm1, %vm250_vm0  ;;  %vm217_vm5 = vcmp.eq.s32.totalorder %v173_v54, %v913_v24  ;;  %vm249_vm7 = vcmp.eq.s32.totalorder %v173_v54, %v918_v25  ;;  %vm411_vm1 = vcmask 48128  }
  0xb8   :  { %vm117_vm3 = vcmp.eq.s32.totalorder %v69_v55, %v913_v24  ;;  %vm137_vm4 = vcmp.eq.s32.totalorder %v69_v55, %v918_v25  ;;  %727 = vmatpush3.msk.msra.mxu0 %vm266_vm2, %v785_v31  ;;  %737 = vmatprep.mubr.msk.f32.mxu1 %vm411_vm1, %v397_v59  ;;  %vm418_vm2 = vcmask 1045504  }
  0xb9   :  { %vm153_vm6 = vmor %vm117_vm3, %vm137_vm4  ;;  %728 = vmatprep.subr.mxu0 %v782_v3  ;;  %vm513_vm3 = vcmask 130048  }
  0xba   :  { %vm233_vm8 = vmor %vm153_vm6, %vm217_vm5  ;;  %v170_v56 = vpop.permute.xlu0 %169 }
  0xbb   :  { %v66_v57 = vpop.permute.xlu1 %65  ;;  %vm265_vm9 = vmor %vm233_vm8, %vm249_vm7  ;;  %vm216_vm12 = vcmp.eq.s32.totalorder %v170_v56, %v913_v24  ;;  %vm248_vm14 = vcmp.eq.s32.totalorder %v170_v56, %v918_v25 }
  0xbc   :  { %vm116_vm10 = vcmp.eq.s32.totalorder %v66_v57, %v913_v24  ;;  %vm136_vm11 = vcmp.eq.s32.totalorder %v66_v57, %v918_v25  ;;  %729 = vmatpush3.msk.msra.mxu0 %vm265_vm9, %v785_v31 }
  0xbd   :  { %vm152_vm13 = vmor %vm116_vm10, %vm136_vm11  ;;  %730 = vmatprep.subr.mxu0 %v782_v3  ;;  %v394_v3 = vstv %s1054_s4 }
  0xbe   :  { %vm232_vm15 = vmor %vm152_vm13, %vm216_vm12  ;;  %v395_v4 = vmul.f32 %v394_v3, %v393_v2 }
  0xbf   :  { %vm264_vm0 = vmor %vm232_vm15, %vm248_vm14  ;;  %v409_v9 = vpop.permute.xlu1 %408  ;;  %v404_v12 = vpop.permute.xlu0 %403 }
  0xc0   :  { %731 = vmatpush3.msk.msra.mxu0 %vm264_vm0, %v785_v31 }
  0xc1   :  { %733 = vmatmul.mubr.f32.vlgmr.msra.gmra.mxu0 %v282_v58 }
  0xc3   :  { %v506_v18 = vpop.permute.xlu1 %505  ;;  %v602_v27 = vpop.permute.xlu0 %601 }
  0xc7   :  { %v511_v19 = vpop.permute.xlu1 %510 }
  0xcb   :  { %v607_v26 = vpop.permute.xlu1 %606 }
 0x181   :  { %v382_v63 = vpop.f32.mrf.mxu0 }
 0x182   :  { %v386_v0 = vadd.f32 %v382_v63, %v315_v62 }
 0x183   :  { %v734_v1 = vpop.f32.mrf.mxu0 }
 0x184   :  { %387 = vst [vmem:[#allocation2] sm:$0x3f] %v386_v0 }
 0x18b   :  { %v392_v5 = vld [vmem:[#allocation2] sm:$0x3f] }
 0x18c   :  { %v396_v6 = vadd.f32 %v395_v4, %v392_v5 }
 0x18e   :  { %735 = vmatprep.subr.msk.mxu1 %vm418_vm2, %v396_v6 }
 0x18f   :  { %736 = vmatpush3.msk.msra.mxu1 %vm418_vm2, %v396_v6 }
 0x190   :  { %738 = vmatmul.mubr.msk.f32.vlgmr.msra.gmra.mxu1 %vm411_vm1, %v398_v7 }
 0x191   :  { %744 = vmatprep.mubr.msk.f32.mxu1 %vm513_vm3, %v499_v8 }
 0x250   :  { %v739_v10 = vpop.f32.mrf.mxu1 }
 0x251   :  { %v494_v11 = vadd.f32 %v739_v10, %v409_v9 }
 0x252   :  { %v488_v13 = vpop.f32.mrf.mxu1 }
 0x253   :  { %v498_v14 = vmax.f32 %v494_v11, 0.0  ;;  %v489_v15 = vadd.f32 %v488_v13, %v404_v12 }
 0x255   :  { %v497_v16 = vmax.f32 %v489_v15, 0.0  ;;  %740 = vmatprep.subr.mxu1 %v498_v14 }
 0x256   :  { %741 = vmatpush3.msra.mxu1 %v498_v14 }
 0x257   :  { %742 = vmatprep.subr.mxu1 %v497_v16 }
 0x258   :  { %743 = vmatpush3.msra.mxu1 %v497_v16 }
 0x259   :  { %745 = vmatmul.mubr.msk.f32.vlgmr.msra.gmra.mxu1 %vm513_vm3, %v500_v17 }
 0x319   :  { %v746_v20 = vpop.f32.mrf.mxu1 }
 0x31a   :  { %v592_v21 = vadd.f32 %v746_v20, %v511_v19 }
 0x31b   :  { %v586_v22 = vpop.f32.mrf.mxu1 }
 0x31c   :  { %v596_v23 = vmax.f32 %v592_v21, 0.0  ;;  %v587_v24 = vadd.f32 %v586_v22, %v506_v18 }
 0x31e   :  { %v595_v25 = vmax.f32 %v587_v24, 0.0  ;;  %v610_v28 = vmul.f32 %v607_v26, %v596_v23 }
 0x320   :  { %v609_v29 = vmul.f32 %v602_v27, %v595_v25 }
 0x322   :  { %v611_v30 = vadd.f32 %v610_v28, %v609_v29 }
 0x324   :  { %v612_v31 = vrot.slane %v611_v30, 4 }
 0x326   :  { %v613_v32 = vadd.f32 %v612_v31, %v611_v30 }
 0x328   :  { %v614_v33 = vrot.slane %v613_v32, 2 }
 0x32a   :  { %v615_v34 = vadd.f32 %v614_v33, %v613_v32 }
 0x32c   :  { %v616_v35 = vrot.slane %v615_v34, 1 }
 0x32e   :  { %v617_v37 = vadd.f32 %v616_v35, %v615_v34 }
 0x330   :  { %v620_v38 = vadd.f32 %v619_v36, %v617_v37 }
 0x332   :  { %v621_v39 = vmax.f32 %v620_v38, 0.0 }
 0x334   :  { %622 = vst [vmem:[#allocation5] sm:$0x1] %v621_v39 }
 0x335   :  { %770 = shalt.err (!%p767_p4)
}
 0x336   :  { %632 = dma.vmem_to_hbm [thread:$0]  %s630_s15, 16, %s1061_s11, [#allocation6]  }
 0x337   :  { %779 = dma.done.wait [#allocation6], 16  }
 0x338   :  { %780 = vsyncadd [#allocation6], 4294967280 }
 0x339   :  { %636 = vsyncpa [#allocation6], 1 }

</bundles_post_ra>
